<compile_context>
chip_gen: v5e
topology: v5e:2x2
jax: 0.10.0
libtpu: 0.0.40
codegen_flags: <defaults>
</compile_context>

<pallas_src>
import numpy as np
import jax
import jax.numpy as jnp
from jax import lax
from jax.experimental import pallas as pl
from jax.experimental.pallas import tpu as pltpu


# pywt.Wavelet('sym6').filter_bank[0]  (decomposition low-pass, length 12),
# hard-coded so the script has no pywt / file dependency.
SYM6_DEC_LO = np.array([
    -0.007800708325034148,
     0.0017677118642428036,
     0.04472490177066578,
    -0.021060292512300564,
    -0.07263752278646252,
     0.3379294217276218,
     0.787641141030194,
     0.4910559419267466,
    -0.048311742585633,
    -0.11799011114819057,
     0.0034907120842174702,
     0.015404109327027373,
], dtype=np.float64)


def _cdiv(a, b):
    return -(-a // b)


def upfirdn1d_matrix(h, n_in, up, down, pad):
    """Dense (n_out, n_in) matrix equal to 1-D upfirdn (StyleGAN2 native semantics):
    zero-stuff by `up`, zero-pad by `pad` both sides, convolve with flipped h
    (i.e. true convolution with h), downsample by `down`."""
    K = len(h)
    n_up = n_in * up + 2 * pad
    n_conv = n_up - K + 1
    n_out = (n_in * up + 2 * pad - K) // down + 1
    w = h[::-1]                      # conv2d(w=flip(h)) == true convolution with h
    A = np.zeros((n_out, n_in), dtype=np.float64)
    for o in range(n_out):
        o_full = o * down
        if o_full >= n_conv:
            continue
        for t in range(K):
            j = o_full + t - pad     # index into zero-stuffed signal
            if 0 <= j < n_in * up and j % up == 0:
                A[o, j // up] += w[t]
    return A.astype(np.float32)


def _vmem_capacity_bytes():
    try:
        return int(pltpu.get_tpu_info().vmem_capacity_bytes)
    except Exception:
        return 64 << 20            # conservative fallback (v7x per-TC VMEM)


def _pick_block_images(B, H, W, OH, OW, vmem_capacity):
    """Largest divisor of B whose double-buffered, tile-padded in+out VMEM footprint fits
    ~25% of VMEM; then prefer an even grid length (v7x megacore) if that does not shrink
    the block below half of the best feasible size."""
    def pad(v, m):
        return _cdiv(v, m) * m
    in_img = pad(H, 8) * pad(W, 128) * 4       # padded (8,128) VMEM tile footprint
    out_img = pad(OH, 8) * pad(OW, 128) * 4
    per_img = 2 * (in_img + out_img)           # x2: double-buffered pipeline blocks
    budget = max(per_img, vmem_capacity // 4)
    cap = max(1, budget // per_img)
    divisors = [d for d in range(1, B + 1) if B % d == 0]
    feasible = [d for d in divisors if d <= cap] or [1]
    b_blk = max(feasible)
    if (B // b_blk) % 2 == 1:                  # odd number of grid steps
        even = [d for d in feasible if (B // d) % 2 == 0]
        if even and max(even) * 2 >= b_blk:
            b_blk = max(even)
    return b_blk


def _make_lowpass_kernel(b_blk, oh, ow):
    unroll = b_blk if b_blk <= 8 else 8

    def lowpass_kernel(awt_ref, ah_ref, x_ref, o_ref):
        # awt_ref : (W, OW8)        ah_ref : (OH8, H)     (zero-padded to sublane multiples)
        # x_ref   : (B_blk, H, W)   o_ref  : (B_blk, OH, OW)   -- exact output, no padding
        a_wt = awt_ref[...]
        a_h = ah_ref[...]

        def body(b, carry):
            xb = x_ref[b]                                               # (H, W)
            tb = jnp.dot(xb, a_wt, preferred_element_type=jnp.float32)  # (H, OW8)
            ob = jnp.dot(a_h, tb, preferred_element_type=jnp.float32)   # (OH8, OW8)
            o_ref[b] = ob[:oh, :ow].astype(o_ref.dtype)
            return carry

        lax.fori_loop(0, b_blk, body, 0, unroll=unroll)

    return lowpass_kernel


def low_pass_filter(x, h=SYM6_DEC_LO, up=2, down=1, block_images=None):
    """Equivalent of LowPassFilter.forward: upfirdn2d(x, h⊗h, up, down, pad=(K-up)//2)."""
    N, C, H, W = x.shape
    K = len(h)
    pad = (K - up) // 2
    A_h = upfirdn1d_matrix(h, H, up, down, pad)      # (OH, H)
    A_w = upfirdn1d_matrix(h, W, up, down, pad)      # (OW, W)
    OH, OW = A_h.shape[0], A_w.shape[0]

    # Pad ONLY the tiny operator matrices to sublane multiples (intermediates never reach
    # HBM); the image input/output keep their exact shapes.
    OH8 = _cdiv(OH, 8) * 8
    OW8 = _cdiv(OW, 8) * 8
    A_h_p = np.zeros((OH8, H), dtype=np.float32)
    A_h_p[:OH, :] = A_h
    A_wt_p = np.zeros((W, OW8), dtype=np.float32)
    A_wt_p[:, :OW] = A_w.T

    B = N * C
    cap_bytes = _vmem_capacity_bytes()
    if block_images is None:
        B_blk = _pick_block_images(B, H, W, OH, OW, cap_bytes)
    else:
        B_blk = int(block_images)
        assert B % B_blk == 0, "block_images must divide N*C"
    n_blocks = B // B_blk

    x3 = x.reshape(B, H, W)                          # metadata-only reshape, no HBM pass

    flops = 2 * B * H * W * OW8 + 2 * B * OH8 * H * OW8
    bytes_accessed = 4 * (B * H * W + B * OH * OW + int(A_h_p.size) + int(A_wt_p.size))
    vmem_limit = int(min(cap_bytes // 2, 96 << 20))

    out3 = pl.pallas_call(
        _make_lowpass_kernel(B_blk, OH, OW),
        out_shape=jax.ShapeDtypeStruct((B, OH, OW), x.dtype),
        grid_spec=pltpu.PrefetchScalarGridSpec(
            num_scalar_prefetch=0,
            grid=(n_blocks,),
            in_specs=[
                # Constant operators: block index (0, 0) every step -> fetched once, resident.
                pl.BlockSpec((W, OW8), lambda i: (0, 0)),        # A_w^T (col-padded)
                pl.BlockSpec((OH8, H), lambda i: (0, 0)),        # A_h   (row-padded)
                # Image blocks: trailing dims equal the full (H, W), so any H, W is legal.
                pl.BlockSpec((B_blk, H, W), lambda i: (i, 0, 0)),
            ],
            # Exact-shape output block (trailing dims == full (OH, OW)): no padded writeback,
            # no post-kernel crop.
            out_specs=pl.BlockSpec((B_blk, OH, OW), lambda i: (i, 0, 0)),
        ),
        compiler_params=pltpu.CompilerParams(
            dimension_semantics=("parallel",),
            vmem_limit_bytes=vmem_limit,
        ),
        cost_estimate=pl.CostEstimate(flops=int(flops), transcendentals=0,
                                      bytes_accessed=int(bytes_accessed)),
    )(jnp.asarray(A_wt_p), jnp.asarray(A_h_p), x3)

    return out3.reshape(N, C, OH, OW)                # metadata-only reshape
    # TODO(synk): at large H/W (>=256) the dense operator does ~K/6x extra FLOPs vs a banded
    # shift-and-accumulate formulation; re-derive the binding unit before reuse there.


def upfirdn2d_reference(x, h, up, down, pad):
    """NumPy re-implementation of StyleGAN2 upfirdn2d_native for verification."""
    x = np.asarray(x, dtype=np.float32)
    N, C, H, W = x.shape
    h32 = h.astype(np.float32)
    k2d = h32[None, :] * h32[:, None]        # sym6[None,:] * sym6[:,None]
    K = k2d.shape[0]
    up_x = np.zeros((N, C, H * up, W * up), dtype=np.float32)
    up_x[:, :, ::up, ::up] = x
    pp = np.pad(up_x, ((0, 0), (0, 0), (pad, pad), (pad, pad)))
    w = k2d[::-1, ::-1]                      # flip -> true convolution
    OH = (H * up + 2 * pad - K) // down + 1
    OW = (W * up + 2 * pad - K) // down + 1
    out = np.zeros((N, C, OH, OW), dtype=np.float32)
    for i in range(K):
        for j in range(K):
            out += w[i, j] * pp[:, :,
                                i:i + (OH - 1) * down + 1:down,
                                j:j + (OW - 1) * down + 1:down]
    return out


if __name__ == "__main__":
    key = jax.random.PRNGKey(0)
    N, C, H, W = 2, 4, 16, 16
    x = jax.random.normal(key, (N, C, H, W), dtype=jnp.float32)

    y = low_pass_filter(x)                   # (2, 4, 31, 31) for sym6, up=2, down=1
    y = jax.block_until_ready(y)

    ref = upfirdn2d_reference(np.asarray(x), SYM6_DEC_LO, up=2, down=1,
                              pad=(len(SYM6_DEC_LO) - 2) // 2)
    np.testing.assert_allclose(np.asarray(y), ref, rtol=1e-4, atol=1e-5)

    print("KERNEL_OK")
</pallas_src>

<mosaic_0001>
module attributes {stable_mosaic.version = 11 : i64} {
  func.func @lowpass_kernel(%arg0: i32, %arg1: memref<16x32xf32, #tpu.memory_space<vmem>>, %arg2: memref<32x16xf32, #tpu.memory_space<vmem>>, %arg3: memref<4x16x16xf32, #tpu.memory_space<vmem>>, %arg4: memref<4x31x31xf32, #tpu.memory_space<vmem>>) attributes {dimension_semantics = [#tpu.dimension_semantics<parallel>], iteration_bounds = array<i64: 2>, scalar_prefetch = 0 : i64, scratch_operands = 0 : i64, tpu.core_type = #tpu.core_type<tc>, window_params = [{pipeline_mode = #tpu.pipeline_mode<synchronous>, transform_indices = @transform_0, window_bounds = array<i64: 16, 32>}, {pipeline_mode = #tpu.pipeline_mode<synchronous>, transform_indices = @transform_1, window_bounds = array<i64: 32, 16>}, {transform_indices = @transform_2, window_bounds = array<i64: 4, 16, 16>}, {transform_indices = @transform_3, window_bounds = array<i64: 4, 31, 31>}]} {
    %c0 = arith.constant 0 : index
    %c0_0 = arith.constant 0 : index
    %0 = vector.load %arg1[%c0, %c0_0] : memref<16x32xf32, #tpu.memory_space<vmem>>, vector<16x32xf32>
    %c0_1 = arith.constant 0 : index
    %c0_2 = arith.constant 0 : index
    %1 = vector.load %arg2[%c0_1, %c0_2] : memref<32x16xf32, #tpu.memory_space<vmem>>, vector<32x16xf32>
    %c0_i32 = arith.constant 0 : i32
    %2 = arith.index_cast %c0_i32 : i32 to index
    %c0_3 = arith.constant 0 : index
    %c0_4 = arith.constant 0 : index
    %3 = vector.load %arg3[%2, %c0_3, %c0_4] : memref<4x16x16xf32, #tpu.memory_space<vmem>>, vector<1x16x16xf32>
    %4 = vector.shape_cast %3 : vector<1x16x16xf32> to vector<16x16xf32>
    %cst = arith.constant dense<0.000000e+00> : vector<16x32xf32>
    %5 = tpu.matmul %4, %0, %cst {dimension_numbers = #tpu.dot_dimension_numbers<[1], [0], [0], [1], [0, 0, 1, 1], [], []>} : vector<16x16xf32>, vector<16x32xf32>, vector<16x32xf32> -> vector<16x32xf32>
    %cst_5 = arith.constant dense<0.000000e+00> : vector<32x32xf32>
    %6 = tpu.matmul %1, %5, %cst_5 {dimension_numbers = #tpu.dot_dimension_numbers<[1], [0], [0], [1], [0, 0, 1, 1], [], []>} : vector<32x16xf32>, vector<16x32xf32>, vector<32x32xf32> -> vector<32x32xf32>
    %7 = vector.extract_strided_slice %6 {offsets = [0, 0], sizes = [31, 31], strides = [1, 1]} : vector<32x32xf32> to vector<31x31xf32>
    %8 = arith.index_cast %c0_i32 : i32 to index
    %c0_6 = arith.constant 0 : index
    %c0_7 = arith.constant 0 : index
    %9 = vector.load %arg4[%8, %c0_6, %c0_7] : memref<4x31x31xf32, #tpu.memory_space<vmem>>, vector<1x31x31xf32>
    %10 = vector.shape_cast %9 : vector<1x31x31xf32> to vector<31x31xf32>
    %11 = vector.shape_cast %7 : vector<31x31xf32> to vector<1x31x31xf32>
    tpu.vector_store %arg4[%8, %c0_6, %c0_7], %11 {strides = array<i32>} : memref<4x31x31xf32, #tpu.memory_space<vmem>>, vector<1x31x31xf32>,
    %c1_i32 = arith.constant 1 : i32
    %12 = arith.index_cast %c1_i32 : i32 to index
    %c0_8 = arith.constant 0 : index
    %c0_9 = arith.constant 0 : index
    %13 = vector.load %arg3[%12, %c0_8, %c0_9] : memref<4x16x16xf32, #tpu.memory_space<vmem>>, vector<1x16x16xf32>
    %14 = vector.shape_cast %13 : vector<1x16x16xf32> to vector<16x16xf32>
    %cst_10 = arith.constant dense<0.000000e+00> : vector<16x32xf32>
    %15 = tpu.matmul %14, %0, %cst_10 {dimension_numbers = #tpu.dot_dimension_numbers<[1], [0], [0], [1], [0, 0, 1, 1], [], []>} : vector<16x16xf32>, vector<16x32xf32>, vector<16x32xf32> -> vector<16x32xf32>
    %cst_11 = arith.constant dense<0.000000e+00> : vector<32x32xf32>
    %16 = tpu.matmul %1, %15, %cst_11 {dimension_numbers = #tpu.dot_dimension_numbers<[1], [0], [0], [1], [0, 0, 1, 1], [], []>} : vector<32x16xf32>, vector<16x32xf32>, vector<32x32xf32> -> vector<32x32xf32>
    %17 = vector.extract_strided_slice %16 {offsets = [0, 0], sizes = [31, 31], strides = [1, 1]} : vector<32x32xf32> to vector<31x31xf32>
    %18 = arith.index_cast %c1_i32 : i32 to index
    %c0_12 = arith.constant 0 : index
    %c0_13 = arith.constant 0 : index
    %19 = vector.load %arg4[%18, %c0_12, %c0_13] : memref<4x31x31xf32, #tpu.memory_space<vmem>>, vector<1x31x31xf32>
    %20 = vector.shape_cast %19 : vector<1x31x31xf32> to vector<31x31xf32>
    %21 = vector.shape_cast %17 : vector<31x31xf32> to vector<1x31x31xf32>
    tpu.vector_store %arg4[%18, %c0_12, %c0_13], %21 {strides = array<i32>} : memref<4x31x31xf32, #tpu.memory_space<vmem>>, vector<1x31x31xf32>,
    %c2_i32 = arith.constant 2 : i32
    %22 = arith.index_cast %c2_i32 : i32 to index
    %c0_14 = arith.constant 0 : index
    %c0_15 = arith.constant 0 : index
    %23 = vector.load %arg3[%22, %c0_14, %c0_15] : memref<4x16x16xf32, #tpu.memory_space<vmem>>, vector<1x16x16xf32>
    %24 = vector.shape_cast %23 : vector<1x16x16xf32> to vector<16x16xf32>
    %cst_16 = arith.constant dense<0.000000e+00> : vector<16x32xf32>
    %25 = tpu.matmul %24, %0, %cst_16 {dimension_numbers = #tpu.dot_dimension_numbers<[1], [0], [0], [1], [0, 0, 1, 1], [], []>} : vector<16x16xf32>, vector<16x32xf32>, vector<16x32xf32> -> vector<16x32xf32>
    %cst_17 = arith.constant dense<0.000000e+00> : vector<32x32xf32>
    %26 = tpu.matmul %1, %25, %cst_17 {dimension_numbers = #tpu.dot_dimension_numbers<[1], [0], [0], [1], [0, 0, 1, 1], [], []>} : vector<32x16xf32>, vector<16x32xf32>, vector<32x32xf32> -> vector<32x32xf32>
    %27 = vector.extract_strided_slice %26 {offsets = [0, 0], sizes = [31, 31], strides = [1, 1]} : vector<32x32xf32> to vector<31x31xf32>
    %28 = arith.index_cast %c2_i32 : i32 to index
    %c0_18 = arith.constant 0 : index
    %c0_19 = arith.constant 0 : index
    %29 = vector.load %arg4[%28, %c0_18, %c0_19] : memref<4x31x31xf32, #tpu.memory_space<vmem>>, vector<1x31x31xf32>
    %30 = vector.shape_cast %29 : vector<1x31x31xf32> to vector<31x31xf32>
    %31 = vector.shape_cast %27 : vector<31x31xf32> to vector<1x31x31xf32>
    tpu.vector_store %arg4[%28, %c0_18, %c0_19], %31 {strides = array<i32>} : memref<4x31x31xf32, #tpu.memory_space<vmem>>, vector<1x31x31xf32>,
    %c3_i32 = arith.constant 3 : i32
    %32 = arith.index_cast %c3_i32 : i32 to index
    %c0_20 = arith.constant 0 : index
    %c0_21 = arith.constant 0 : index
    %33 = vector.load %arg3[%32, %c0_20, %c0_21] : memref<4x16x16xf32, #tpu.memory_space<vmem>>, vector<1x16x16xf32>
    %34 = vector.shape_cast %33 : vector<1x16x16xf32> to vector<16x16xf32>
    %cst_22 = arith.constant dense<0.000000e+00> : vector<16x32xf32>
    %35 = tpu.matmul %34, %0, %cst_22 {dimension_numbers = #tpu.dot_dimension_numbers<[1], [0], [0], [1], [0, 0, 1, 1], [], []>} : vector<16x16xf32>, vector<16x32xf32>, vector<16x32xf32> -> vector<16x32xf32>
    %cst_23 = arith.constant dense<0.000000e+00> : vector<32x32xf32>
    %36 = tpu.matmul %1, %35, %cst_23 {dimension_numbers = #tpu.dot_dimension_numbers<[1], [0], [0], [1], [0, 0, 1, 1], [], []>} : vector<32x16xf32>, vector<16x32xf32>, vector<32x32xf32> -> vector<32x32xf32>
    %37 = vector.extract_strided_slice %36 {offsets = [0, 0], sizes = [31, 31], strides = [1, 1]} : vector<32x32xf32> to vector<31x31xf32>
    %38 = arith.index_cast %c3_i32 : i32 to index
    %c0_24 = arith.constant 0 : index
    %c0_25 = arith.constant 0 : index
    %39 = vector.load %arg4[%38, %c0_24, %c0_25] : memref<4x31x31xf32, #tpu.memory_space<vmem>>, vector<1x31x31xf32>
    %40 = vector.shape_cast %39 : vector<1x31x31xf32> to vector<31x31xf32>
    %41 = vector.shape_cast %37 : vector<31x31xf32> to vector<1x31x31xf32>
    tpu.vector_store %arg4[%38, %c0_24, %c0_25], %41 {strides = array<i32>} : memref<4x31x31xf32, #tpu.memory_space<vmem>>, vector<1x31x31xf32>,
    %c4_i32 = arith.constant 4 : i32
    return
  }
  func.func @transform_0(%arg0: i32) -> (i32, i32) {
    %c0_i32 = arith.constant 0 : i32
    %c0_i32_0 = arith.constant 0 : i32
    %c0_i32_1 = arith.constant 0 : i32
    return %c0_i32, %c0_i32_0 : i32, i32
  }
  func.func @transform_1(%arg0: i32) -> (i32, i32) {
    %c0_i32 = arith.constant 0 : i32
    %c0_i32_0 = arith.constant 0 : i32
    %c0_i32_1 = arith.constant 0 : i32
    return %c0_i32, %c0_i32_0 : i32, i32
  }
  func.func @transform_2(%arg0: i32) -> (i32, i32, i32) {
    %c0_i32 = arith.constant 0 : i32
    %c0_i32_0 = arith.constant 0 : i32
    %c0_i32_1 = arith.constant 0 : i32
    return %arg0, %c0_i32, %c0_i32_0 : i32, i32, i32
  }
  func.func @transform_3(%arg0: i32) -> (i32, i32, i32) {
    %c0_i32 = arith.constant 0 : i32
    %c0_i32_0 = arith.constant 0 : i32
    %c0_i32_1 = arith.constant 0 : i32
    return %arg0, %c0_i32, %c0_i32_0 : i32, i32, i32
  }
}

</mosaic_0001>

<bundles_post_ra>
// kernel: tpu_custom_call.1
= control target key start
LH: loop header
LB: loop body
LE: loop exit
PB: predicated region body
PF: predicated region fallthrough
CT: control target
= control target key end

     0   :  { %8 = vsyncpa [#allocation3], 0  ;;  %s908_s0 = inlined_call_operand.vmem [shape: f32[16,32], index: 0, kind: input, shape index: {}]   ;;  %s909_s1 = inlined_call_operand.vmem [shape: f32[32,16], index: 1, kind: input, shape index: {}]   ;;  %s910_s2 = inlined_call_operand.hbm [shape: f32[8,16,16], index: 2, kind: input, shape index: {}]   ;;  %s911_s3 = inlined_call_operand.vmem [shape: f32[8,31,31], index: 3, kind: output, shape index: {}]  }
   0x1   :  { %10 = vsyncpa [#allocation3 + $0x1], 0  ;;  %s741_s12 = smov 0   ;;  %s743_s13 = smov 0  }
   0x2   :  { %s745_s14 = smov 0   ;;  %s747_s15 = smov 0  }
   0x3 LB: > { %s550_s16 = sadd.s32 4294967295, %s717_s15   ;;  %s761_s17 = sadd.s32 1, %s717_s15   ;;  %s717_s15 = sphi %s747_s15, %s918_s15   ;;  %s713_s14 = sphi %s745_s14, %s917_s14   ;;  %s709_s13 = sphi %s743_s13, %s916_s13   ;;  %s705_s12 = sphi %s741_s12, %s915_s12  }
   0x4   : > { %s62_s18 = ssub.s32 %s717_s15, %s761_s17  ;;  %s65_s19 = sadd.s32 1, %s713_s14 }
   0x5   : > { %p63_p0 = scmp.eq.s32.totalorder %s62_s18, 0  ;;  %p72_p1 = scmp.ne.s32.totalorder %s713_s14, %s709_s13 }
   0x6   : > { %p73_p2 = scmp.eq.s32.totalorder %s717_s15, 0  ;;  %p78_p3 = scmp.ne.s32.totalorder %s709_s13, %s705_s12 }
   0x7   : > { %s771_s20 = scalar_select %p63_p0, %s713_s14, %s65_s19  }
   0x8   : > { %p773_p4 = por %p73_p2, %p72_p1  ;;  %p79_p5 = scmp.eq.s32.totalorder %s550_s16, 0 }
   0x9   : > { %p618_p6 = scmp.lt.s32.totalorder %s717_s15, 2  ;;  %s134_s23 = sand.u32 1, %s713_s14  }
   0xa   : > { %p780_p7 = por %p79_p5, %p78_p3  ;;  %s554_s24 = sshll.u32 %s134_s23, 6 }
   0xb   : > { %s608_s25 = sshll.u32 %s717_s15, 6  ;;  %s138_s29 = scalar_lea.vmem [#allocation2], %s554_s24 }
   0xc   : > { %s144_s28 = scalar_lea.hbm %s910_s2, %s608_s25  ;;  %s147_s30 = sshll.u32 %s138_s29, 4  ;;  %s148_s30 = int_to_ptr.vmem [resolvable:$true] %s147_s30 }
   0xd   : > { %s145_s4 = sshll.u32 %s144_s28, 4  ;;  %p791_p8 = pnand %p618_p6, %p773_p4  ;;  %s146_s4 = int_to_ptr.hbm [resolvable:$true] %s145_s4 }
   0xe   : > { %p558_p9 = scmp.ge.s32.totalorder %s717_s15, 1  ;;  %s135_s6 = scalar_lea.sflag [#allocation3], %s134_s23 }
   0xf   : > { %s653_s7 = sshra.s32 %s146_s4, 4  ;;  %p657_p11 = pneg %p791_p8  ;;  %s654_s7 = int_to_ptr.hbm [resolvable:$true] %s653_s7 }
  0x10   : > { %s655_s8 = scalar_lea.hbm %s654_s7, 64  ;;  %s660_s11 = scalar_lea.hbm %s910_s2, 128 }
  0x11   : > { %p656_p10 = scmp.ne.s32.totalorder %s654_s7, %s655_s8  ;;  %p661_p0 = scmp.lt.s32.totalorder %s654_s7, %s910_s2 }
  0x12   : > { %p662_p1 = scmp.lt.s32.totalorder %s660_s11, %s655_s8 }
  0x13   : > { %p658_p12 = pnand %p657_p11, %p656_p10 }
  0x14   : > { %p663_p2 = por %p662_p1, %p661_p0 }
  0x15   : > { %p659_p13 = pneg %p658_p12 }
  0x17   : > { %p664_p3 = pnand %p663_p2, %p659_p13 }
  0x19   : > { %667 = shalt.err (!%p664_p3)
}
  0x1a   : > { %s719_s19 = smov 128   ;;  %s720_s21 = smov 8  }
  0x1b   : > { %617 = dma.hbm_to_vmem [thread:$0]  (!%p791_p8), %s146_s4, 1024, %s148_s30, %s135_s6, %s719_s19, %s719_s19, %s720_s21  }
  0x1c   : > { %p155_p4 = scmp.lt.s32.totalorder %s717_s15, 3 }
  0x1e   : > { %p156_p5 = pnand %p558_p9, %p155_p4 }
  0x1f   : > { %s161_s23 = sand.u32 (!%p156_p5), 1, %s709_s13  }
  0x20   : > { %159 = sbr.rel (%p156_p5) target bundleno = 362 (0x16a), region = 32  ;;  %s559_s24 = sshll.u32 (!%p156_p5), %s161_s23, 6 }
  0x21   : > { %s162_s25 = scalar_lea.sflag (!%p156_p5), [#allocation3], %s161_s23  ;;  %s165_s26 = scalar_lea.vmem (!%p156_p5), [#allocation2], %s559_s24 }
  0x25   : > { %700 = dma.done.wait (%p780_p7), %s162_s25, 1024  }
  0x26   : > { %702 = vsyncadd (%p780_p7), %s162_s25, 4294966272  ;;  %v199_v0 = vld [vmem:[%s908_s0 + $0x8] sm:$0xff]  ;;  %v198_v1 = vld [vmem:[%s908_s0] sm:$0xff]  ;;  %vm206_vm0 = vcmask 130048   ;;  %s560_s11 = sshll.u32 %s550_s16, 2  ;;  %vm277_vm1 = vcmask 252928  }
  0x27   : > { %227 = vmatpush.msra.mxu0 %v199_v0  ;;  %v204_v2 = vld [vmem:[%s165_s26] sm:$0xff]  ;;  %306 = vmatpush.msra.mxu2 %v199_v0  ;;  %v569_v3 = vld [vmem:[%s165_s26 + $0x10] sm:$0xff]  ;;  %v205_v4 = vld [vmem:[%s165_s26 + $0x8] sm:$0xff]  ;;  %p192_p6 = scmp.lt.s32.totalorder %s560_s11, 7  ;;  %vm281_vm2 = vcmask 251904  }
  0x28   : > { %v570_v5 = vld [vmem:[%s165_s26 + $0x18] sm:$0xff]  ;;  %v581_v6 = vld [vmem:[%s165_s26 + $0x20] sm:$0xff]  ;;  %v582_v7 = vld [vmem:[%s165_s26 + $0x28] sm:$0xff] }
  0x29   : > { %228 = vmatpush.msra.mxu0 %v198_v1  ;;  %307 = vmatpush.msra.mxu2 %v198_v1  ;;  %v593_v8 = vld [vmem:[%s165_s26 + $0x30] sm:$0xff]  ;;  %v594_v9 = vld [vmem:[%s165_s26 + $0x38] sm:$0xff]  ;;  %v200_v14 = vld [vmem:[%s909_s1] sm:$0xff]  ;;  %s920_s11 = smov (!%p192_p6, %s560_s11), 7 }
  0x2a   : > { %563 = vmatmul.msk.f32.vlgmr.msra.gmra.mxu0 %vm206_vm0, %v204_v2  ;;  %571 = vmatmul.msk.f32.vlgmr.msra.gmra.mxu2 %vm206_vm0, %v569_v3  ;;  %v202_v13 = vld [vmem:[%s909_s1 + $0x10] sm:$0xff]  ;;  %v203_v17 = vld [vmem:[%s909_s1 + $0x18] sm:$0xff]  ;;  %v201_v18 = vld [vmem:[%s909_s1 + $0x8] sm:$0xff]  ;;  %s609_s12 = sshll.u32 %s920_s11, 5 }
  0x2b   : > { %372 = vmatpush.msrb.mxu0 %v199_v0  ;;  %s861_s21 = scalar_lea.vmem %s911_s3, %s609_s12 }
  0x2d   : > { %373 = vmatpush.msrb.mxu0 %v198_v1 }
  0x2f   : > { %438 = vmatpush.msra.mxu0 %v199_v0 }
  0x31   : > { %439 = vmatpush.msra.mxu0 %v198_v1 }
  0x32   : > { %564 = vmatmul.msk.f32.gmra.mxu0 %vm206_vm0, %v205_v4  ;;  %572 = vmatmul.msk.f32.gmra.mxu2 %vm206_vm0, %v570_v5 }
  0x3a   : > { %583 = vmatmul.msk.f32.vlgmr.msrb.gmra.mxu0 %vm206_vm0, %v581_v6 }
  0x42   : > { %584 = vmatmul.msk.f32.gmra.mxu0 %vm206_vm0, %v582_v7 }
  0x4a   : > { %595 = vmatmul.msk.f32.vlgmr.msra.gmra.mxu0 %vm206_vm0, %v593_v8 }
  0x52   : > { %596 = vmatmul.msk.f32.gmra.mxu0 %vm206_vm0, %v594_v9 }
  0xa7   : > { %v230_v10 = vpop.f32.mrf.mxu0 }
  0xad   : > { %v309_v11 = vpop.f32.mrf.mxu2 }
  0xaf   : > { %v233_v12 = vpop.f32.mrf.mxu0 }
  0xb0   : > { %262 = vmatpush.msra.mxu1 %v233_v12  ;;  %610 = vmatpush.msra.mxu3 %v233_v12 }
  0xb2   : > { %263 = vmatpush.msra.mxu1 %v230_v10  ;;  %611 = vmatpush.msra.mxu3 %v230_v10 }
  0xb3   : > { %567 = vmatmul.msk.f32.vlgmr.msra.gmra.mxu3 %vm206_vm0, %v202_v13  ;;  %565 = vmatmul.msk.f32.vlgmr.msra.gmra.mxu1 %vm206_vm0, %v200_v14 }
  0xb5   : > { %v312_v15 = vpop.f32.mrf.mxu2 }
  0xb6   : > { %329 = vmatpush.msrb.mxu3 %v312_v15 }
  0xb7   : > { %v375_v16 = vpop.f32.mrf.mxu0 }
  0xb8   : > { %330 = vmatpush.msrb.mxu3 %v309_v11 }
  0xbb   : > { %568 = vmatmul.msk.f32.gmra.mxu3 %vm206_vm0, %v203_v17  ;;  %566 = vmatmul.msk.f32.gmra.mxu1 %vm206_vm0, %v201_v18 }
  0xbf   : > { %v378_v19 = vpop.f32.mrf.mxu0 }
  0xc0   : > { %395 = vmatpush.msrb.mxu2 %v378_v19 }
  0xc2   : > { %396 = vmatpush.msrb.mxu2 %v375_v16 }
  0xc3   : > { %573 = vmatmul.msk.f32.vlgmr.msrb.gmra.mxu3 %vm206_vm0, %v200_v14  ;;  %585 = vmatmul.msk.f32.vlgmr.msrb.gmra.mxu2 %vm206_vm0, %v200_v14 }
  0xc7   : > { %v441_v20 = vpop.f32.mrf.mxu0 }
  0xcb   : > { %574 = vmatmul.msk.f32.gmra.mxu3 %vm206_vm0, %v201_v18  ;;  %586 = vmatmul.msk.f32.gmra.mxu2 %vm206_vm0, %v201_v18 }
  0xcf   : > { %v444_v21 = vpop.f32.mrf.mxu0 }
  0xd0   : > { %461 = vmatpush.msrb.mxu1 %v444_v21 }
  0xd2   : > { %462 = vmatpush.msrb.mxu1 %v441_v20 }
  0xd3   : > { %597 = vmatmul.msk.f32.vlgmr.msrb.gmra.mxu1 %vm206_vm0, %v200_v14  ;;  %575 = vmatmul.msk.f32.gmra.mxu3 %vm206_vm0, %v202_v13 }
  0xd4   : > { %587 = vmatmul.msk.f32.gmra.mxu2 %vm206_vm0, %v202_v13 }
  0xdb   : > { %598 = vmatmul.msk.f32.gmra.mxu1 %vm206_vm0, %v201_v18  ;;  %576 = vmatmul.msk.f32.gmra.mxu3 %vm206_vm0, %v203_v17 }
  0xdc   : > { %588 = vmatmul.msk.f32.gmra.mxu2 %vm206_vm0, %v203_v17 }
  0xe3   : > { %599 = vmatmul.msk.f32.gmra.mxu1 %vm206_vm0, %v202_v13 }
  0xeb   : > { %600 = vmatmul.msk.f32.gmra.mxu1 %vm206_vm0, %v203_v17 }
 0x130   : > { %v265_v22 = vpop.f32.mrf.mxu1 }
 0x131   : > { %278 = vst.msk [vmem:[%s861_s21] sm:$0xff] %vm277_vm1, %v265_v22 }
 0x136   : > { %v271_v23 = vpop.f32.mrf.mxu3 }
 0x137   : > { %280 = vst.msk [vmem:[%s861_s21 + $0x10] sm:$0xff] %vm277_vm1, %v271_v23 }
 0x138   : > { %v268_v24 = vpop.f32.mrf.mxu1 }
 0x139   : > { %279 = vst.msk [vmem:[%s861_s21 + $0x8] sm:$0xff] %vm277_vm1, %v268_v24 }
 0x13e   : > { %v274_v25 = vpop.f32.mrf.mxu3 }
 0x13f   : > { %282 = vst.msk [vmem:[%s861_s21 + $0x18] sm:$0x7f] %vm281_vm2, %v274_v25 }
 0x146   : > { %v332_v26 = vpop.f32.mrf.mxu3  ;;  %v398_v27 = vpop.f32.mrf.mxu2 }
 0x147   : > { %577 = vst.msk [vmem:[%s861_s21 + $0x20] sm:$0xff] %vm277_vm1, %v332_v26 }
 0x148   : > { %589 = vst.msk [vmem:[%s861_s21 + $0x40] sm:$0xff] %vm277_vm1, %v398_v27 }
 0x14e   : > { %v335_v28 = vpop.f32.mrf.mxu3  ;;  %v401_v29 = vpop.f32.mrf.mxu2 }
 0x14f   : > { %578 = vst.msk [vmem:[%s861_s21 + $0x28] sm:$0xff] %vm277_vm1, %v335_v28 }
 0x150   : > { %v464_v30 = vpop.f32.mrf.mxu1  ;;  %590 = vst.msk [vmem:[%s861_s21 + $0x48] sm:$0xff] %vm277_vm1, %v401_v29 }
 0x151   : > { %601 = vst.msk [vmem:[%s861_s21 + $0x60] sm:$0xff] %vm277_vm1, %v464_v30 }
 0x156   : > { %v338_v31 = vpop.f32.mrf.mxu3 }
 0x157   : > { %579 = vst.msk [vmem:[%s861_s21 + $0x30] sm:$0xff] %vm277_vm1, %v338_v31  ;;  %v404_v32 = vpop.f32.mrf.mxu2 }
 0x158   : > { %v467_v33 = vpop.f32.mrf.mxu1  ;;  %591 = vst.msk [vmem:[%s861_s21 + $0x50] sm:$0xff] %vm277_vm1, %v404_v32 }
 0x159   : > { %602 = vst.msk [vmem:[%s861_s21 + $0x68] sm:$0xff] %vm277_vm1, %v467_v33 }
 0x15e   : > { %v341_v34 = vpop.f32.mrf.mxu3 }
 0x15f   : > { %580 = vst.msk [vmem:[%s861_s21 + $0x38] sm:$0x7f] %vm281_vm2, %v341_v34  ;;  %v407_v35 = vpop.f32.mrf.mxu2 }
 0x160   : > { %v470_v36 = vpop.f32.mrf.mxu1  ;;  %592 = vst.msk [vmem:[%s861_s21 + $0x58] sm:$0x7f] %vm281_vm2, %v407_v35 }
 0x161   : > { %603 = vst.msk [vmem:[%s861_s21 + $0x70] sm:$0xff] %vm277_vm1, %v470_v36 }
 0x168   : > { %v473_v37 = vpop.f32.mrf.mxu1 }
 0x169   : > { %604 = vst.msk [vmem:[%s861_s21 + $0x78] sm:$0x7f] %vm281_vm2, %v473_v37 }
 0x16a PF: > { %p13_p7 = scmp.ge.s32.totalorder %s761_s17, 4   ;;  %s915_s12 = smov %s709_s13 }
 0x16b   : > { %s916_s13 = smov %s713_s14  ;;  %s917_s14 = smov %s771_s20 }
 0x16c   : > { %s918_s15 = smov %s761_s17  ;;  %15 = sbr.rel (!%p13_p7) target bundleno = 3 (0x3), region = 78 }
 0x171   :  { %505 = vsyncpa [#allocation3], 1 }
 0x172   :  { %507 = vsyncpa [#allocation3 + $0x1], 1 }

</bundles_post_ra>
